<compile_context>
chip_gen: v7x
topology: tpu7x:2x2x1
jax: 0.10.0
libtpu: 0.0.40
codegen_flags: <defaults>
</compile_context>

<pallas_src>
import jax
import jax.numpy as jnp
from jax.experimental import pallas as pl
from jax.experimental.pallas import tpu as pltpu


def _focus_conv_kernel(x_ref, w_ref, bias_ref, o_ref):
    # x_ref:    (K, tp)  in-channels x pixel-lanes   (one batch, one pixel tile)
    # w_ref:    (N, K)   out-channels x in-channels  (BN scale already folded in)
    # bias_ref: (N, 1)   folded BatchNorm bias
    # o_ref:    (N, tp)  out-channels x pixel-lanes  (flattened NCHW slab)
    y = jnp.dot(w_ref[...], x_ref[...], preferred_element_type=jnp.float32)
    y = y + bias_ref[...]
    # SiLU: y * sigmoid(y), computed in f32.
    o_ref[...] = (y * jax.nn.sigmoid(y)).astype(o_ref.dtype)


def _pick_pixel_tile(P, target=2048):
    # Lane-axis block sizes must be a multiple of 128 or equal the full dim.
    if P <= target:
        return P          # single full-extent tile per batch (always legal)
    return target         # target is a multiple of 128; ragged last tile is masked


def focus_pointwise_conv(xs3d, w_scaled, bias, *, pixel_tile=2048):
    """xs3d: (B, K, P), w_scaled: (N, K), bias: (N, 1) -> (B, N, P)."""
    B, K, P = xs3d.shape
    N = w_scaled.shape[0]
    tp = _pick_pixel_tile(P, pixel_tile)
    grid = (B, pl.cdiv(P, tp))
    return pl.pallas_call(
        _focus_conv_kernel,
        out_shape=jax.ShapeDtypeStruct((B, N, P), xs3d.dtype),
        grid_spec=pltpu.PrefetchScalarGridSpec(
            num_scalar_prefetch=0,
            grid=grid,
            in_specs=[
                # batch dim squeezed out of the kernel refs
                pl.BlockSpec((None, K, tp), lambda b, p: (b, 0, p)),
                pl.BlockSpec((N, K), lambda b, p: (0, 0)),
                pl.BlockSpec((N, 1), lambda b, p: (0, 0)),
            ],
            out_specs=pl.BlockSpec((None, N, tp), lambda b, p: (b, 0, p)),
        ),
        compiler_params=pltpu.CompilerParams(
            dimension_semantics=("parallel", "parallel")),
    )(xs3d, w_scaled, bias)


def focus_forward(x, conv_w, bn_gamma, bn_beta, bn_mean, bn_var, *, eps=1e-5,
                  pixel_tile=2048):
    """Focus.forward for ksize=1, stride=1 (the module defaults).

    x: (B, C, H, W) NCHW float32
    conv_w: (C_out, 4*C, 1, 1) float32  (Conv2d weight, bias=False)
    returns: (B, C_out, H//2, W//2) NCHW float32
    """
    b, c, h, w = x.shape
    cout = conv_w.shape[0]
    ho, wo = h // 2, w // 2

    # --- space-to-depth (single fused XLA pass; channel order matches torch.cat) ---
    # TODO(synk): fuse this stride-2 gather directly into the kernel (memory_space=pl.ANY
    # + strided DMA / in-kernel de-interleave) to save one extra HBM read+write of the
    # activation; currently it costs one fused slice+concat pass in plain XLA.
    tl = x[..., ::2, ::2]
    tr = x[..., ::2, 1::2]
    bl = x[..., 1::2, ::2]
    br = x[..., 1::2, 1::2]
    xs = jnp.concatenate((tl, bl, tr, br), axis=1)           # (b, 4c, ho, wo)
    xs3d = xs.reshape(b, 4 * c, ho * wo)                     # free (contiguous) reshape

    # fold eval-mode BatchNorm into the 1x1 conv weight + a per-channel bias
    inv_std = 1.0 / jnp.sqrt(bn_var + eps)
    scale = bn_gamma * inv_std                               # (cout,)
    w_scaled = conv_w.reshape(cout, 4 * c) * scale[:, None]  # (N, K)
    bias = (bn_beta - bn_mean * scale).reshape(cout, 1)      # (N, 1)

    # TODO(synk): ksize > 1 would need a true spatial conv kernel; module defaults use ksize=1.
    y3d = focus_pointwise_conv(xs3d, w_scaled, bias, pixel_tile=pixel_tile)  # (b, N, P)
    return y3d.reshape(b, cout, ho, wo)                      # free reshape back to NCHW


def _reference_forward(x, conv_w, bn_gamma, bn_beta, bn_mean, bn_var, eps=1e-5):
    """Pure-JAX reference (same math, no Pallas) for a sanity check."""
    tl = x[..., ::2, ::2]
    tr = x[..., ::2, 1::2]
    bl = x[..., 1::2, ::2]
    br = x[..., 1::2, 1::2]
    xs = jnp.concatenate((tl, bl, tr, br), axis=1)
    y = jnp.einsum('bchw,oc->bohw', xs, conv_w[:, :, 0, 0])
    scale = (bn_gamma / jnp.sqrt(bn_var + eps))[None, :, None, None]
    bias = (bn_beta - bn_mean * bn_gamma / jnp.sqrt(bn_var + eps))[None, :, None, None]
    y = y * scale + bias
    return y * jax.nn.sigmoid(y)


if __name__ == "__main__":
    key = jax.random.PRNGKey(0)
    k_x, k_w, k_g, k_b, k_m, k_v = jax.random.split(key, 6)

    B, C, H, W = 2, 4, 16, 16
    C_OUT = 32

    x = jax.random.normal(k_x, (B, C, H, W), dtype=jnp.float32)
    conv_w = jax.random.normal(k_w, (C_OUT, 4 * C, 1, 1), dtype=jnp.float32) * 0.1
    bn_gamma = 1.0 + 0.1 * jax.random.normal(k_g, (C_OUT,), dtype=jnp.float32)
    bn_beta = 0.1 * jax.random.normal(k_b, (C_OUT,), dtype=jnp.float32)
    bn_mean = 0.1 * jax.random.normal(k_m, (C_OUT,), dtype=jnp.float32)
    bn_var = jnp.abs(1.0 + 0.1 * jax.random.normal(k_v, (C_OUT,), dtype=jnp.float32))

    out = jax.jit(focus_forward)(x, conv_w, bn_gamma, bn_beta, bn_mean, bn_var)
    out = jax.block_until_ready(out)

    ref = _reference_forward(x, conv_w, bn_gamma, bn_beta, bn_mean, bn_var)
    assert out.shape == (B, C_OUT, H // 2, W // 2), out.shape
    assert jnp.allclose(out, ref, atol=1e-4, rtol=1e-4), float(jnp.max(jnp.abs(out - ref)))

    print("KERNEL_OK")
</pallas_src>

<mosaic_0001>
module attributes {stable_mosaic.version = 11 : i64} {
  func.func @_focus_conv_kernel(%arg0: i32, %arg1: i32, %arg2: memref<1x16x64xf32, #tpu.memory_space<vmem>>, %arg3: memref<32x16xf32, #tpu.memory_space<vmem>>, %arg4: memref<32x1xf32, #tpu.memory_space<vmem>>, %arg5: memref<1x32x64xf32, #tpu.memory_space<vmem>>) attributes {dimension_semantics = [#tpu.dimension_semantics<parallel>, #tpu.dimension_semantics<parallel>], iteration_bounds = array<i64: 2, 1>, scalar_prefetch = 0 : i64, scratch_operands = 0 : i64, tpu.core_type = #tpu.core_type<tc>, window_params = [{transform_indices = @transform_0, window_bounds = array<i64: 1, 16, 64>}, {pipeline_mode = #tpu.pipeline_mode<synchronous>, transform_indices = @transform_1, window_bounds = array<i64: 32, 16>}, {pipeline_mode = #tpu.pipeline_mode<synchronous>, transform_indices = @transform_2, window_bounds = array<i64: 32, 1>}, {transform_indices = @transform_3, window_bounds = array<i64: 1, 32, 64>}]} {
    %c0 = arith.constant 0 : index
    %c0_0 = arith.constant 0 : index
    %0 = vector.load %arg3[%c0, %c0_0] : memref<32x16xf32, #tpu.memory_space<vmem>>, vector<32x16xf32>
    %c0_1 = arith.constant 0 : index
    %c0_2 = arith.constant 0 : index
    %c0_3 = arith.constant 0 : index
    %1 = vector.load %arg2[%c0_1, %c0_2, %c0_3] : memref<1x16x64xf32, #tpu.memory_space<vmem>>, vector<1x16x64xf32>
    %2 = vector.shape_cast %1 : vector<1x16x64xf32> to vector<16x64xf32>
    %cst = arith.constant dense<0.000000e+00> : vector<32x64xf32>
    %3 = tpu.matmul %0, %2, %cst {dimension_numbers = #tpu.dot_dimension_numbers<[1], [0], [0], [1], [0, 0, 1, 1], [], []>} : vector<32x16xf32>, vector<16x64xf32>, vector<32x64xf32> -> vector<32x64xf32>
    %c0_4 = arith.constant 0 : index
    %c0_5 = arith.constant 0 : index
    %4 = vector.load %arg4[%c0_4, %c0_5] : memref<32x1xf32, #tpu.memory_space<vmem>>, vector<32x1xf32>
    %5 = vector.broadcast %4 : vector<32x1xf32> to vector<32x64xf32>
    %6 = arith.addf %3, %5 : vector<32x64xf32>
    %7 = arith.negf %6 : vector<32x64xf32>
    %8 = math.exp %7 : vector<32x64xf32>
    %cst_6 = arith.constant 1.000000e+00 : f32
    %9 = vector.broadcast %cst_6 : f32 to vector<32x64xf32>
    %10 = arith.addf %9, %8 : vector<32x64xf32>
    %11 = arith.divf %9, %10 : vector<32x64xf32>
    %12 = arith.mulf %6, %11 : vector<32x64xf32>
    %c0_7 = arith.constant 0 : index
    %c0_8 = arith.constant 0 : index
    %c0_9 = arith.constant 0 : index
    %13 = vector.load %arg5[%c0_7, %c0_8, %c0_9] : memref<1x32x64xf32, #tpu.memory_space<vmem>>, vector<1x32x64xf32>
    %14 = vector.shape_cast %13 : vector<1x32x64xf32> to vector<32x64xf32>
    %15 = vector.shape_cast %12 : vector<32x64xf32> to vector<1x32x64xf32>
    tpu.vector_store %arg5[%c0_7, %c0_8, %c0_9], %15 {strides = array<i32>} : memref<1x32x64xf32, #tpu.memory_space<vmem>>, vector<1x32x64xf32>,
    return
  }
  func.func @transform_0(%arg0: i32, %arg1: i32) -> (i32, i32, i32) {
    %c0_i32 = arith.constant 0 : i32
    %c0_i32_0 = arith.constant 0 : i32
    return %arg0, %c0_i32, %arg1 : i32, i32, i32
  }
  func.func @transform_1(%arg0: i32, %arg1: i32) -> (i32, i32) {
    %c0_i32 = arith.constant 0 : i32
    %c0_i32_0 = arith.constant 0 : i32
    %c0_i32_1 = arith.constant 0 : i32
    return %c0_i32, %c0_i32_0 : i32, i32
  }
  func.func @transform_2(%arg0: i32, %arg1: i32) -> (i32, i32) {
    %c0_i32 = arith.constant 0 : i32
    %c0_i32_0 = arith.constant 0 : i32
    %c0_i32_1 = arith.constant 0 : i32
    return %c0_i32, %c0_i32_0 : i32, i32
  }
  func.func @transform_3(%arg0: i32, %arg1: i32) -> (i32, i32, i32) {
    %c0_i32 = arith.constant 0 : i32
    %c0_i32_0 = arith.constant 0 : i32
    return %arg0, %c0_i32, %arg1 : i32, i32, i32
  }
}

</mosaic_0001>

<bundles_post_ra>
// kernel: focus_forward.1
= control target key start
LH: loop header
LB: loop body
LE: loop exit
PB: predicated region body
PF: predicated region fallthrough
CT: control target
= control target key end

     0   :  { %s577_s12 = smov 0   ;;  %s579_s13 = smov 0   ;;  %s642_s0 = inlined_call_operand.vmem [shape: f32[2,16,64], index: 0, kind: input, shape index: {}]   ;;  %s643_s1 = inlined_call_operand.vmem [shape: f32[32,16], index: 1, kind: input, shape index: {}]   ;;  %s644_s2 = inlined_call_operand.vmem [shape: f32[32,1], index: 2, kind: input, shape index: {}]   ;;  %s645_s3 = inlined_call_operand.vmem [shape: f32[2,32,64], index: 3, kind: output, shape index: {}]  }
   0x1   :  { %s581_s14 = smov 0  }
   0x2 LB: > { %s25_s15 = sadd.s32 1, %s550_s13  ;;  %p450_p0 = scmp.ge.s32.totalorder %s554_s14, 1  ;;  %s554_s14 = sphi %s581_s14, %s13_s14   ;;  %s550_s13 = sphi %s579_s13, %s647_s13   ;;  %s546_s12 = sphi %s577_s12, %s646_s12  }
   0x3   : > { %p27_p1 = scmp.ge.s32.totalorder %s25_s15, 2  ;;  %p156_p2 = scmp.lt.s32.totalorder %s554_s14, 3 }
   0x5   : > { %s649_s15 = smov (%p27_p1, %s25_s15), 0  ;;  %p157_p3 = pnand %p450_p0, %p156_p2 }
   0x6   : > { %p186_p4 = scmp.lt.s32.totalorder (!%p157_p3), %s546_s12, 1  ;;  %v202_v0 = vld [vmem:[%s643_s1] sm:$0xff] (!%p157_p3)  ;;  %vm232_vm0 = vcmask (!%p157_p3), 130048   ;;  %v204_v1 = vld [vmem:[%s643_s1 + $0x10] sm:$0xff] (!%p157_p3)  ;;  %v556_v4 = vmov (!%p157_p3), 0   ;;  %v211_v5 = vld [vmem:[%s644_s2 + $0x18] sm:$0xff] (!%p157_p3) }
   0x7   : > { %160 = sbr.rel (%p157_p3) target bundleno = 270 (0x10e), region = 32  ;;  %477 = vmatprep.mubr.msk.f32.mxu0 (!%p157_p3), %vm232_vm0, %v202_v0  ;;  %480 = vmatprep.mubr.msk.f32.mxu1 (!%p157_p3), %vm232_vm0, %v204_v1  ;;  %v210_v2 = vld [vmem:[%s644_s2 + $0x10] sm:$0xff] (!%p157_p3)  ;;  %v208_v3 = vld [vmem:[%s644_s2] sm:$0xff] (!%p157_p3)  ;;  %v209_v6 = vld [vmem:[%s644_s2 + $0x8] sm:$0xff] (!%p157_p3)  ;;  %vm358_vm1 = vcmask (!%p157_p3), 523264  }
   0x8   : > { %515 = vset.pattern.permute.xlu1 (!%p157_p3), %v556_v4  ;;  %514 = vset.pattern.permute.xlu0 (!%p157_p3), %v556_v4  ;;  %v203_v10 = vld [vmem:[%s643_s1 + $0x8] sm:$0xff] (!%p157_p3)  ;;  %v205_v11 = vld [vmem:[%s643_s1 + $0x18] sm:$0xff] (!%p157_p3) }
   0x9   : > { %224 = vperm.xlu1 (!%p157_p3), %515, %v210_v2   ;;  %214 = vperm.xlu0 (!%p157_p3), %514, %v208_v3  }
   0xd   : > { %229 = vperm.xlu1 (!%p157_p3), %515, %v211_v5   ;;  %219 = vperm.xlu0 (!%p157_p3), %514, %v209_v6  }
   0xe   : > { %s651_s12 = smov (!%p186_p4, %s546_s12), 1 }
   0xf   : > { %s465_s24 = sshll.u32 %s651_s12, 4  ;;  %s466_s9 = sshll.u32 %s651_s12, 5 }
  0x10   : > { %s193_s4 = scalar_lea.vmem %s642_s0, %s465_s24  ;;  %s201_s16 = scalar_lea.vmem %s645_s3, %s466_s9 }
  0x11   : > { %v206_v7 = vld [vmem:[%s193_s4] sm:$0xff]  ;;  %v207_v8 = vld [vmem:[%s193_s4 + $0x8] sm:$0xff] }
  0x12   : > { %v483_v9 = vpack.c.bf16 %v207_v8, %v206_v7 }
  0x14   : > { %484 = vmatprep.subr.bf16.mxu0 %v483_v9  ;;  %487 = vmatprep.subr.bf16.mxu1 %v483_v9 }
  0x15   : > { %486 = vmatpush3.bf16.msra.mxu0 %v483_v9  ;;  %488 = vmatpush3.bf16.msra.mxu1 %v483_v9 }
  0x18   : > { %478 = vmatmul.mubr.msk.f32.vlgmr.msra.gmra.mrb[0].mxu0 %vm232_vm0, %v203_v10  ;;  %481 = vmatmul.mubr.msk.f32.vlgmr.msra.gmra.mrb[0].mxu1 %vm232_vm0, %v205_v11 }
  0x88   : > { %v225_v12 = vpop.permute.xlu1 %224  ;;  %v215_v13 = vpop.permute.xlu0 %214 }
  0x8c   : > { %v230_v14 = vpop.permute.xlu1 %229  ;;  %v220_v15 = vpop.permute.xlu0 %219 }
  0xeb   : > { %v479_v16 = vpop.f32.mrb[0].mxu0  ;;  %v482_v17 = vpop.f32.mrb[0].mxu1 }
  0xec   : > { %v317_v18 = vadd.f32 %v479_v16, %v220_v15  ;;  %v327_v19 = vadd.f32 %v482_v17, %v230_v14  ;;  %v311_v20 = vpop.f32.mrb[1].mxu0  ;;  %v321_v21 = vpop.f32.mrb[1].mxu1 }
  0xed   : > { %v312_v22 = vadd.f32 %v311_v20, %v215_v13  ;;  %v322_v23 = vadd.f32 %v321_v21, %v225_v12 }
  0xee   : > { %v460_v24 = vmul.f32 -1.442695, %v317_v18  ;;  %v462_v25 = vmul.f32 -1.442695, %v327_v19 }
  0xef   : > { %v459_v26 = vmul.f32 -1.442695, %v312_v22  ;;  %v461_v27 = vmul.f32 -1.442695, %v322_v23 }
  0xf0   : > { %516 = vpow2.f32 %v460_v24 }
  0xf1   : > { %518 = vpow2.f32 %v462_v25 }
  0xf2   : > { %520 = vpow2.f32 %v459_v26 }
  0xf3   : > { %522 = vpow2.f32 %v461_v27 }
  0xfa   : > { %v517_v28 = vpop.eup %516 }
  0xfb   : > { %v519_v29 = vpop.eup %518  ;;  %v343_v30 = vadd.f32 1.0, %v517_v28 }
  0xfc   : > { %v521_v31 = vpop.eup %520  ;;  %v345_v32 = vadd.f32 1.0, %v519_v29 }
  0xfd   : > { %v523_v33 = vpop.eup %522  ;;  %524 = vrcp.f32 %v343_v30  ;;  %v342_v34 = vadd.f32 1.0, %v521_v31 }
  0xfe   : > { %526 = vrcp.f32 %v345_v32  ;;  %v344_v35 = vadd.f32 1.0, %v523_v33 }
  0xff   : > { %528 = vrcp.f32 %v342_v34 }
 0x100   : > { %530 = vrcp.f32 %v344_v35 }
 0x107   : > { %v525_v36 = vpop.eup %524 }
 0x108   : > { %v527_v37 = vpop.eup %526  ;;  %v355_v38 = vmul.f32 %v525_v36, %v317_v18 }
 0x109   : > { %v529_v39 = vpop.eup %528  ;;  %v357_v40 = vmul.f32 %v527_v37, %v327_v19 }
 0x10a   : > { %v531_v41 = vpop.eup %530  ;;  %360 = vst.msk [vmem:[%s201_s16 + $0x8] sm:$0xff] %vm358_vm1, %v355_v38  ;;  %v354_v42 = vmul.f32 %v529_v39, %v312_v22 }
 0x10b   : > { %362 = vst.msk [vmem:[%s201_s16 + $0x18] sm:$0xff] %vm358_vm1, %v357_v40  ;;  %v356_v43 = vmul.f32 %v531_v41, %v322_v23 }
 0x10c   : > { %359 = vst.msk [vmem:[%s201_s16] sm:$0xff] %vm358_vm1, %v354_v42 }
 0x10d   : > { %361 = vst.msk [vmem:[%s201_s16 + $0x10] sm:$0xff] %vm358_vm1, %v356_v43 }
 0x10e PF: > { %s13_s14 = sadd.s32 1, %s554_s14   ;;  %s646_s12 = smov %s550_s13 }
 0x10f   : > { %p10_p5 = scmp.ge.s32.totalorder %s13_s14, 4   ;;  %s647_s13 = smov %s649_s15 }
 0x111   :  { %12 = sbr.rel (!%p10_p5) target bundleno = 2 (0x2), region = 62 }

</bundles_post_ra>
